<compile_context>
chip_gen: v5e
topology: v5e:2x2
jax: 0.10.0
libtpu: 0.0.40
codegen_flags: <defaults>
</compile_context>

<pallas_src>
import jax
import jax.numpy as jnp
from jax.experimental import pallas as pl
from jax.experimental.pallas import tpu as pltpu

# ----- small, self-consistent config (AIModelConfig analogue, shrunk) -----
NUM_ASSETS = 16      # N (num_nodes)
FEATURE_DIM = 16     # F
HIDDEN_DIM = 32      # config.hidden_dim
EMBED_DIM = 32       # config.embedding_dim  (== HIDDEN_DIM, relied on by the weight packing)
HEADS = 4            # config.attention_heads
NEG_SLOPE = 0.2      # GATConv LeakyReLU default


def _gnn_kernel(x_ref, edge_ref, mats_ref, vatt_ref, wcomb_ref, bias_ref, out_ref):
    f32 = jnp.float32
    bf16 = jnp.bfloat16
    n = x_ref.shape[0]
    num_edges = edge_ref.shape[1]

    # ---------- adjacency (+ self loops) and GCN normalization, built in VMEM ----------
    edges = edge_ref[...]                                  # (2, E) int32, E lane-dense
    src = edges[0:1, :]                                    # (1, E) source node of each edge
    dst = edges[1:2, :]                                    # (1, E) target node of each edge
    node_id = jax.lax.broadcasted_iota(jnp.int32, (n, num_edges), 0)   # (N, E)
    src_oh = (node_id == src).astype(f32)                  # (N, E): [j, e] = (src[e] == j)
    dst_oh = (node_id == dst).astype(f32)                  # (N, E): [i, e] = (dst[e] == i)
    # A_cnt[i, j] = #edges j -> i  (contract the shared edge axis; both one-hots stay lane-dense)
    a_cnt = jnp.einsum('ie,je->ij', dst_oh, src_oh, preferred_element_type=f32)   # (N, N)
    ri = jax.lax.broadcasted_iota(jnp.int32, (n, n), 0)
    ci = jax.lax.broadcasted_iota(jnp.int32, (n, n), 1)
    adj_b = (a_cnt > 0.5) | (ri == ci)                     # bool adjacency with self loops
    adj = adj_b.astype(f32)
    adj_bf = adj.astype(bf16)                              # MXU operand for aggregation
    deg = jnp.sum(adj, axis=1, keepdims=True)              # (N, 1) in-degree incl. self loop
    dinv = jax.lax.rsqrt(deg)                              # deg >= 1 always

    mats = mats_ref[...]        # (3, 32, 32) bf16: w1(pad), w2, w3
    biases = bias_ref[...]      # (6, 32) f32: b1, b2, b3, bh1_eff, w_out row, bh2 (col 0)

    # ---------- GCNConv x3:  relu( D^-1/2 A D^-1/2 (h @ W) + b ) ----------
    def gcn(hcur, w_b, b):
        hw = jnp.dot(hcur.astype(bf16), w_b, preferred_element_type=f32)            # (N, 32)
        agg = jnp.dot(adj_bf, (dinv * hw).astype(bf16), preferred_element_type=f32) # (N, 32)
        return jnp.maximum(dinv * agg + b, 0.0)

    h = gcn(x_ref[...], mats[0], biases[0:1, :])
    h = gcn(h, mats[1], biases[1:2, :])
    h = gcn(h, mats[2], biases[2:3, :])                    # (N, EMBED) f32

    # ---------- GATConv (heads batched; Wg pre-folded host-side into vatt / wcomb) ----------
    hb = jnp.broadcast_to(h.astype(bf16), (HEADS, n, EMBED_DIM))       # (H, N, E) bf16
    vatt = vatt_ref[...]                                   # (2H, 1, E) bf16
    v_dst, v_src = vatt[:HEADS], vatt[HEADS:]
    # d[h,i] = a_dst_h . (W_g_h^T h_i),  s[h,j] = a_src_h . (W_g_h^T h_j)   (Wg folded into v)
    d_col = jnp.einsum('hnf,hof->hno', hb, v_dst, preferred_element_type=f32)   # (H, N, 1)
    s_row = jnp.einsum('hof,hnf->hon', v_src, hb, preferred_element_type=f32)   # (H, 1, N)

    e = d_col + s_row                                      # (H, N, N) VPU broadcast add
    e = jnp.where(e > 0, e, NEG_SLOPE * e)                 # LeakyReLU(0.2), f32
    e = jnp.where(adj_b[None, :, :], e, -1e30)             # mask non-edges (single where)
    e = e - jnp.max(e, axis=-1, keepdims=True)
    p = jnp.exp(e)                                         # masked entries underflow to exactly 0
    alpha = p * pl.reciprocal(jnp.sum(p, axis=-1, keepdims=True), approx=True)   # softmax over srcs

    # (concat_h att_h) @ Wh1  ==  sum_h alpha_h @ (h @ Wg_h @ Wh1_h)  ==  sum_h alpha_h @ m_h
    m = jnp.einsum('hnf,hfk->hnk', hb, wcomb_ref[...], preferred_element_type=f32)   # (H, N, HID)
    z = jnp.einsum('hnm,hmk->hnk', alpha.astype(bf16), m.astype(bf16),
                   preferred_element_type=f32)                                        # (H, N, HID)
    z = jnp.maximum(jnp.sum(z, axis=0) + biases[3:4, :], 0.0)                         # (N, HIDDEN)

    # ---------- head: Linear(HIDDEN,1) + Sigmoid, then softmax over nodes (lane-dense (1,N)) ----------
    logit = jnp.einsum('ok,nk->on', biases[4:5, :].astype(bf16), z.astype(bf16),
                       preferred_element_type=f32) + biases[5:6, 0:1]                 # (1, N)
    sig = 1.0 / (1.0 + jnp.exp(-logit))                    # Sigmoid
    mx = jnp.max(sig, axis=-1, keepdims=True)
    ew = jnp.exp(sig - mx)
    out_ref[...] = ew / jnp.sum(ew, axis=-1, keepdims=True)   # (1, N) softmax over nodes


def init_params(key):
    ks = jax.random.split(key, 12)
    f32 = jnp.float32
    return {
        # GCNConv weights stored as (in, out); biases as (1, out)
        "w1": 0.1 * jax.random.normal(ks[0], (FEATURE_DIM, HIDDEN_DIM), f32),
        "b1": jnp.zeros((1, HIDDEN_DIM), f32),
        "w2": 0.1 * jax.random.normal(ks[1], (HIDDEN_DIM, HIDDEN_DIM), f32),
        "b2": jnp.zeros((1, HIDDEN_DIM), f32),
        "w3": 0.1 * jax.random.normal(ks[2], (HIDDEN_DIM, EMBED_DIM), f32),
        "b3": jnp.zeros((1, EMBED_DIM), f32),
        # GATConv: shared lin (in, heads*out), attention vectors (heads, out), bias (1, heads*out)
        "wg": 0.1 * jax.random.normal(ks[3], (EMBED_DIM, HEADS * EMBED_DIM), f32),
        "asrc": 0.1 * jax.random.normal(ks[4], (HEADS, EMBED_DIM), f32),
        "adst": 0.1 * jax.random.normal(ks[5], (HEADS, EMBED_DIM), f32),
        "bg": jnp.zeros((1, HEADS * EMBED_DIM), f32),
        # portfolio head
        "wh1": 0.1 * jax.random.normal(ks[6], (HEADS * EMBED_DIM, HIDDEN_DIM), f32),
        "bh1": jnp.zeros((1, HIDDEN_DIM), f32),
        "wh2": 0.1 * jax.random.normal(ks[7], (HIDDEN_DIM, 1), f32),
        "bh2": jnp.zeros((1, 1), f32),
    }


def pack_params(params):
    """Host-side packing/folding: 14 tensors -> 4 slabs (bf16 MXU weights, f32 bias slab)."""
    f32 = jnp.float32
    bf16 = jnp.bfloat16

    # (3, 32, 32) bf16: padded w1, w2, w3  (GCN weights)
    w1_pad = jnp.zeros((HIDDEN_DIM, HIDDEN_DIM), f32).at[:FEATURE_DIM, :].set(params["w1"])
    mats = jnp.stack([w1_pad, params["w2"], params["w3"]], axis=0).astype(bf16)

    # per-head views of the GAT lin weight and of the first head-Linear
    wg_h = params["wg"].reshape(EMBED_DIM, HEADS, EMBED_DIM).transpose(1, 0, 2)   # (H, F, E)
    wh1_h = params["wh1"].reshape(HEADS, EMBED_DIM, HIDDEN_DIM)                   # (H, E, K)

    # fold Wg into the attention vectors:  v_h = Wg_h @ a_h   -> (2H, 1, EMBED) rows, bf16
    v_dst = jnp.einsum('hfe,he->hf', wg_h, params["adst"])                        # (H, F)
    v_src = jnp.einsum('hfe,he->hf', wg_h, params["asrc"])                        # (H, F)
    vatt = jnp.concatenate([v_dst[:, None, :], v_src[:, None, :]], axis=0).astype(bf16)

    # fold Wg into the head Linear:  Wcomb_h = Wg_h @ Wh1_h   -> (H, EMBED, HIDDEN), bf16
    wcomb = jnp.einsum('hfe,hek->hfk', wg_h, wh1_h).astype(bf16)

    # (6, 32) f32: b1, b2, b3, (bh1 + bg @ wh1), wh2^T row, bh2 (stored in col 0)
    bh1_eff = params["bh1"] + params["bg"] @ params["wh1"]      # fold GAT bias into head Linear bias
    w_out_row = params["wh2"].T                                 # (1, HIDDEN)
    bh2_row = jnp.zeros((1, HIDDEN_DIM), f32).at[0, 0].set(params["bh2"][0, 0])
    biases = jnp.concatenate([params["b1"], params["b2"], params["b3"],
                              bh1_eff, w_out_row, bh2_row], axis=0)

    return {"mats": mats, "vatt": vatt, "wcomb": wcomb, "biases": biases}


@jax.jit
def gnn_forward(x, edge_index, packed):
    n, f = x.shape
    # pad features to the (32-wide) packed weight layout; extra columns hit zero weight rows
    x_pad = jnp.zeros((n, HIDDEN_DIM), jnp.float32).at[:, :f].set(x.astype(jnp.float32))
    edges = edge_index.astype(jnp.int32)                    # (2, E), edge axis lane-dense

    args = (x_pad, edges, packed["mats"], packed["vatt"], packed["wcomb"], packed["biases"])

    out = pl.pallas_call(
        _gnn_kernel,
        out_shape=jax.ShapeDtypeStruct((1, n), jnp.float32),
        in_specs=[pl.BlockSpec(memory_space=pltpu.MemorySpace.VMEM)] * len(args),
        out_specs=pl.BlockSpec(memory_space=pltpu.MemorySpace.VMEM),
    )(*args)
    return out[0]                                            # (N,) portfolio weights


if __name__ == "__main__":
    key = jax.random.PRNGKey(0)
    k_x, k_p = jax.random.split(key)

    # deterministic node features
    x = jax.random.normal(k_x, (NUM_ASSETS, FEATURE_DIM), jnp.float32)

    # deterministic bidirectional ring graph: edge_index (2, num_edges)
    src = jnp.arange(NUM_ASSETS, dtype=jnp.int32)
    dst = (src + 1) % NUM_ASSETS
    edge_index = jnp.concatenate(
        [jnp.stack([src, dst], axis=0), jnp.stack([dst, src], axis=0)], axis=1)

    params = init_params(k_p)
    packed = pack_params(params)                             # pack + fold once, host-side

    weights = gnn_forward(x, edge_index, packed)
    weights = jax.block_until_ready(weights)

    assert weights.shape == (NUM_ASSETS,)
    assert bool(jnp.isfinite(weights).all())
    assert abs(float(jnp.sum(weights)) - 1.0) < 1e-4         # softmax over nodes sums to 1
    print("KERNEL_OK")
</pallas_src>

<mosaic_0001>
module attributes {stable_mosaic.version = 11 : i64} {
  func.func @_gnn_kernel(%arg0: memref<16x32xf32, #tpu.memory_space<vmem>>, %arg1: memref<2x32xi32, #tpu.memory_space<vmem>>, %arg2: memref<3x32x32xbf16, #tpu.memory_space<vmem>>, %arg3: memref<8x1x32xbf16, #tpu.memory_space<vmem>>, %arg4: memref<4x32x32xbf16, #tpu.memory_space<vmem>>, %arg5: memref<6x32xf32, #tpu.memory_space<vmem>>, %arg6: memref<1x16xf32, #tpu.memory_space<vmem>>) attributes {dimension_semantics = [], scalar_prefetch = 0 : i64, scratch_operands = 0 : i64, tpu.core_type = #tpu.core_type<tc>} {
    %c0 = arith.constant 0 : index
    %c0_0 = arith.constant 0 : index
    %0 = vector.load %arg1[%c0, %c0_0] : memref<2x32xi32, #tpu.memory_space<vmem>>, vector<2x32xi32>
    %1 = vector.extract_strided_slice %0 {offsets = [0, 0], sizes = [1, 32], strides = [1, 1]} : vector<2x32xi32> to vector<1x32xi32>
    %2 = vector.extract_strided_slice %0 {offsets = [1, 0], sizes = [1, 32], strides = [1, 1]} : vector<2x32xi32> to vector<1x32xi32>
    %3 = tpu.iota {dimensions = array<i32: 0>} : vector<16x32xi32>
    %4 = vector.broadcast %1 : vector<1x32xi32> to vector<16x32xi32>
    %5 = arith.cmpi eq, %3, %4 : vector<16x32xi32>
    %6 = arith.extui %5 : vector<16x32xi1> to vector<16x32xi32>
    %7 = arith.sitofp %6 : vector<16x32xi32> to vector<16x32xf32>
    %8 = vector.broadcast %2 : vector<1x32xi32> to vector<16x32xi32>
    %9 = arith.cmpi eq, %3, %8 : vector<16x32xi32>
    %10 = arith.extui %9 : vector<16x32xi1> to vector<16x32xi32>
    %11 = arith.sitofp %10 : vector<16x32xi32> to vector<16x32xf32>
    "tpu.trace_start"() <{level = 10 : i32, message = "ie,je->ij"}> : () -> ()
    %cst = arith.constant dense<0.000000e+00> : vector<16x16xf32>
    %12 = tpu.matmul %11, %7, %cst {dimension_numbers = #tpu.dot_dimension_numbers<[1], [1], [0], [0], [0, 0, 1, 0], [], []>} : vector<16x32xf32>, vector<16x32xf32>, vector<16x16xf32> -> vector<16x16xf32>
    "tpu.trace_stop"() : () -> ()
    %13 = tpu.iota {dimensions = array<i32: 0>} : vector<16x16xi32>
    %14 = tpu.iota {dimensions = array<i32: 1>} : vector<16x16xi32>
    %cst_1 = arith.constant 5.000000e-01 : f32
    %15 = vector.broadcast %cst_1 : f32 to vector<16x16xf32>
    %16 = arith.cmpf ogt, %12, %15 : vector<16x16xf32>
    %17 = arith.cmpi eq, %13, %14 : vector<16x16xi32>
    %18 = arith.ori %16, %17 : vector<16x16xi1>
    %19 = arith.extui %18 : vector<16x16xi1> to vector<16x16xi32>
    %20 = arith.sitofp %19 : vector<16x16xi32> to vector<16x16xf32>
    %21 = arith.truncf %20 : vector<16x16xf32> to vector<16x16xbf16>
    %cst_2 = arith.constant dense<0.000000e+00> : vector<16xf32>
    %22 = vector.multi_reduction <add>, %20, %cst_2 [1] : vector<16x16xf32> to vector<16xf32>
    %23 = vector.shape_cast %22 : vector<16xf32> to vector<16x1xf32>
    %24 = math.rsqrt %23 : vector<16x1xf32>
    %c0_3 = arith.constant 0 : index
    %c0_4 = arith.constant 0 : index
    %c0_5 = arith.constant 0 : index
    %25 = vector.load %arg2[%c0_3, %c0_4, %c0_5] : memref<3x32x32xbf16, #tpu.memory_space<vmem>>, vector<3x32x32xbf16>
    %c0_6 = arith.constant 0 : index
    %c0_7 = arith.constant 0 : index
    %26 = vector.load %arg5[%c0_6, %c0_7] : memref<6x32xf32, #tpu.memory_space<vmem>>, vector<6x32xf32>
    %c0_8 = arith.constant 0 : index
    %c0_9 = arith.constant 0 : index
    %27 = vector.load %arg0[%c0_8, %c0_9] : memref<16x32xf32, #tpu.memory_space<vmem>>, vector<16x32xf32>
    %28 = vector.extract_strided_slice %25 {offsets = [0, 0, 0], sizes = [1, 32, 32], strides = [1, 1, 1]} : vector<3x32x32xbf16> to vector<1x32x32xbf16>
    %29 = vector.shape_cast %28 : vector<1x32x32xbf16> to vector<32x32xbf16>
    %30 = vector.extract_strided_slice %26 {offsets = [0, 0], sizes = [1, 32], strides = [1, 1]} : vector<6x32xf32> to vector<1x32xf32>
    %31 = arith.truncf %27 : vector<16x32xf32> to vector<16x32xbf16>
    %cst_10 = arith.constant dense<0.000000e+00> : vector<16x32xf32>
    %32 = tpu.matmul %31, %29, %cst_10 {dimension_numbers = #tpu.dot_dimension_numbers<[1], [0], [0], [1], [0, 0, 1, 1], [], []>} : vector<16x32xbf16>, vector<32x32xbf16>, vector<16x32xf32> -> vector<16x32xf32>
    %33 = vector.broadcast %24 : vector<16x1xf32> to vector<16x32xf32>
    %34 = arith.mulf %33, %32 : vector<16x32xf32>
    %35 = arith.truncf %34 : vector<16x32xf32> to vector<16x32xbf16>
    %cst_11 = arith.constant dense<0.000000e+00> : vector<16x32xf32>
    %36 = tpu.matmul %21, %35, %cst_11 {dimension_numbers = #tpu.dot_dimension_numbers<[1], [0], [0], [1], [0, 0, 1, 1], [], []>} : vector<16x16xbf16>, vector<16x32xbf16>, vector<16x32xf32> -> vector<16x32xf32>
    %37 = vector.broadcast %24 : vector<16x1xf32> to vector<16x32xf32>
    %38 = arith.mulf %37, %36 : vector<16x32xf32>
    %39 = vector.broadcast %30 : vector<1x32xf32> to vector<16x32xf32>
    %40 = arith.addf %38, %39 : vector<16x32xf32>
    %cst_12 = arith.constant 0.000000e+00 : f32
    %41 = vector.broadcast %cst_12 : f32 to vector<16x32xf32>
    %42 = arith.maximumf %40, %41 : vector<16x32xf32>
    %43 = vector.extract_strided_slice %25 {offsets = [1, 0, 0], sizes = [1, 32, 32], strides = [1, 1, 1]} : vector<3x32x32xbf16> to vector<1x32x32xbf16>
    %44 = vector.shape_cast %43 : vector<1x32x32xbf16> to vector<32x32xbf16>
    %45 = vector.extract_strided_slice %26 {offsets = [1, 0], sizes = [1, 32], strides = [1, 1]} : vector<6x32xf32> to vector<1x32xf32>
    %46 = arith.truncf %42 : vector<16x32xf32> to vector<16x32xbf16>
    %cst_13 = arith.constant dense<0.000000e+00> : vector<16x32xf32>
    %47 = tpu.matmul %46, %44, %cst_13 {dimension_numbers = #tpu.dot_dimension_numbers<[1], [0], [0], [1], [0, 0, 1, 1], [], []>} : vector<16x32xbf16>, vector<32x32xbf16>, vector<16x32xf32> -> vector<16x32xf32>
    %48 = vector.broadcast %24 : vector<16x1xf32> to vector<16x32xf32>
    %49 = arith.mulf %48, %47 : vector<16x32xf32>
    %50 = arith.truncf %49 : vector<16x32xf32> to vector<16x32xbf16>
    %cst_14 = arith.constant dense<0.000000e+00> : vector<16x32xf32>
    %51 = tpu.matmul %21, %50, %cst_14 {dimension_numbers = #tpu.dot_dimension_numbers<[1], [0], [0], [1], [0, 0, 1, 1], [], []>} : vector<16x16xbf16>, vector<16x32xbf16>, vector<16x32xf32> -> vector<16x32xf32>
    %52 = vector.broadcast %24 : vector<16x1xf32> to vector<16x32xf32>
    %53 = arith.mulf %52, %51 : vector<16x32xf32>
    %54 = vector.broadcast %45 : vector<1x32xf32> to vector<16x32xf32>
    %55 = arith.addf %53, %54 : vector<16x32xf32>
    %cst_15 = arith.constant 0.000000e+00 : f32
    %56 = vector.broadcast %cst_15 : f32 to vector<16x32xf32>
    %57 = arith.maximumf %55, %56 : vector<16x32xf32>
    %58 = vector.extract_strided_slice %25 {offsets = [2, 0, 0], sizes = [1, 32, 32], strides = [1, 1, 1]} : vector<3x32x32xbf16> to vector<1x32x32xbf16>
    %59 = vector.shape_cast %58 : vector<1x32x32xbf16> to vector<32x32xbf16>
    %60 = vector.extract_strided_slice %26 {offsets = [2, 0], sizes = [1, 32], strides = [1, 1]} : vector<6x32xf32> to vector<1x32xf32>
    %61 = arith.truncf %57 : vector<16x32xf32> to vector<16x32xbf16>
    %cst_16 = arith.constant dense<0.000000e+00> : vector<16x32xf32>
    %62 = tpu.matmul %61, %59, %cst_16 {dimension_numbers = #tpu.dot_dimension_numbers<[1], [0], [0], [1], [0, 0, 1, 1], [], []>} : vector<16x32xbf16>, vector<32x32xbf16>, vector<16x32xf32> -> vector<16x32xf32>
    %63 = vector.broadcast %24 : vector<16x1xf32> to vector<16x32xf32>
    %64 = arith.mulf %63, %62 : vector<16x32xf32>
    %65 = arith.truncf %64 : vector<16x32xf32> to vector<16x32xbf16>
    %cst_17 = arith.constant dense<0.000000e+00> : vector<16x32xf32>
    %66 = tpu.matmul %21, %65, %cst_17 {dimension_numbers = #tpu.dot_dimension_numbers<[1], [0], [0], [1], [0, 0, 1, 1], [], []>} : vector<16x16xbf16>, vector<16x32xbf16>, vector<16x32xf32> -> vector<16x32xf32>
    %67 = vector.broadcast %24 : vector<16x1xf32> to vector<16x32xf32>
    %68 = arith.mulf %67, %66 : vector<16x32xf32>
    %69 = vector.broadcast %60 : vector<1x32xf32> to vector<16x32xf32>
    %70 = arith.addf %68, %69 : vector<16x32xf32>
    %cst_18 = arith.constant 0.000000e+00 : f32
    %71 = vector.broadcast %cst_18 : f32 to vector<16x32xf32>
    %72 = arith.maximumf %70, %71 : vector<16x32xf32>
    %73 = arith.truncf %72 : vector<16x32xf32> to vector<16x32xbf16>
    %74 = vector.shape_cast %73 : vector<16x32xbf16> to vector<1x16x32xbf16>
    %75 = vector.broadcast %74 : vector<1x16x32xbf16> to vector<4x16x32xbf16>
    %c0_19 = arith.constant 0 : index
    %c0_20 = arith.constant 0 : index
    %c0_21 = arith.constant 0 : index
    %76 = vector.load %arg3[%c0_19, %c0_20, %c0_21] : memref<8x1x32xbf16, #tpu.memory_space<vmem>>, vector<8x1x32xbf16>
    %77 = vector.extract_strided_slice %76 {offsets = [0, 0, 0], sizes = [4, 1, 32], strides = [1, 1, 1]} : vector<8x1x32xbf16> to vector<4x1x32xbf16>
    %78 = vector.extract_strided_slice %76 {offsets = [4, 0, 0], sizes = [4, 1, 32], strides = [1, 1, 1]} : vector<8x1x32xbf16> to vector<4x1x32xbf16>
    "tpu.trace_start"() <{level = 10 : i32, message = "hnf,hof->hno"}> : () -> ()
    %cst_22 = arith.constant dense<0.000000e+00> : vector<4x16x1xf32>
    %79 = tpu.matmul %75, %77, %cst_22 {dimension_numbers = #tpu.dot_dimension_numbers<[2], [2], [1], [1], [0, 0, 0, 1, 1, 1], [0], [0]>} : vector<4x16x32xbf16>, vector<4x1x32xbf16>, vector<4x16x1xf32> -> vector<4x16x1xf32>
    "tpu.trace_stop"() : () -> ()
    "tpu.trace_start"() <{level = 10 : i32, message = "hof,hnf->hon"}> : () -> ()
    %cst_23 = arith.constant dense<0.000000e+00> : vector<4x1x16xf32>
    %80 = tpu.matmul %78, %75, %cst_23 {dimension_numbers = #tpu.dot_dimension_numbers<[2], [2], [1], [1], [0, 0, 0, 1, 1, 1], [0], [0]>} : vector<4x1x32xbf16>, vector<4x16x32xbf16>, vector<4x1x16xf32> -> vector<4x1x16xf32>
    "tpu.trace_stop"() : () -> ()
    %81 = vector.broadcast %79 : vector<4x16x1xf32> to vector<4x16x16xf32>
    %82 = vector.broadcast %80 : vector<4x1x16xf32> to vector<4x16x16xf32>
    %83 = arith.addf %81, %82 : vector<4x16x16xf32>
    %cst_24 = arith.constant 0.000000e+00 : f32
    %84 = vector.broadcast %cst_24 : f32 to vector<4x16x16xf32>
    %85 = arith.cmpf ogt, %83, %84 : vector<4x16x16xf32>
    %cst_25 = arith.constant 2.000000e-01 : f32
    %86 = vector.broadcast %cst_25 : f32 to vector<4x16x16xf32>
    %87 = arith.mulf %86, %83 : vector<4x16x16xf32>
    %88 = arith.select %85, %83, %87 : vector<4x16x16xi1>, vector<4x16x16xf32>
    %89 = vector.shape_cast %18 : vector<16x16xi1> to vector<1x16x16xi1>
    %cst_26 = arith.constant -1.000000e+30 : f32
    %90 = vector.shape_cast %89 : vector<1x16x16xi1> to vector<1x16x16xi1>
    %91 = vector.broadcast %90 : vector<1x16x16xi1> to vector<4x16x16xi1>
    %92 = vector.broadcast %cst_26 : f32 to vector<4x16x16xf32>
    %93 = arith.select %91, %88, %92 : vector<4x16x16xi1>, vector<4x16x16xf32>
    %cst_27 = arith.constant dense<0xFF800000> : vector<4x16xf32>
    %94 = vector.multi_reduction <maximumf>, %93, %cst_27 [2] : vector<4x16x16xf32> to vector<4x16xf32>
    %95 = vector.shape_cast %94 : vector<4x16xf32> to vector<4x16x1xf32>
    %96 = vector.broadcast %95 : vector<4x16x1xf32> to vector<4x16x16xf32>
    %97 = arith.subf %93, %96 : vector<4x16x16xf32>
    %98 = math.exp %97 : vector<4x16x16xf32>
    %cst_28 = arith.constant dense<0.000000e+00> : vector<4x16xf32>
    %99 = vector.multi_reduction <add>, %98, %cst_28 [2] : vector<4x16x16xf32> to vector<4x16xf32>
    %100 = vector.shape_cast %99 : vector<4x16xf32> to vector<4x16x1xf32>
    %101 = tpu.reciprocal %100 {approx = true} : vector<4x16x1xf32> -> vector<4x16x1xf32>
    %102 = vector.broadcast %101 : vector<4x16x1xf32> to vector<4x16x16xf32>
    %103 = arith.mulf %98, %102 : vector<4x16x16xf32>
    %c0_29 = arith.constant 0 : index
    %c0_30 = arith.constant 0 : index
    %c0_31 = arith.constant 0 : index
    %104 = vector.load %arg4[%c0_29, %c0_30, %c0_31] : memref<4x32x32xbf16, #tpu.memory_space<vmem>>, vector<4x32x32xbf16>
    "tpu.trace_start"() <{level = 10 : i32, message = "hnf,hfk->hnk"}> : () -> ()
    %cst_32 = arith.constant dense<0.000000e+00> : vector<4x16x32xf32>
    %105 = tpu.matmul %75, %104, %cst_32 {dimension_numbers = #tpu.dot_dimension_numbers<[2], [1], [1], [2], [0, 0, 0, 1, 1, 2], [0], [0]>} : vector<4x16x32xbf16>, vector<4x32x32xbf16>, vector<4x16x32xf32> -> vector<4x16x32xf32>
    "tpu.trace_stop"() : () -> ()
    %106 = arith.truncf %103 : vector<4x16x16xf32> to vector<4x16x16xbf16>
    %107 = arith.truncf %105 : vector<4x16x32xf32> to vector<4x16x32xbf16>
    "tpu.trace_start"() <{level = 10 : i32, message = "hnm,hmk->hnk"}> : () -> ()
    %cst_33 = arith.constant dense<0.000000e+00> : vector<4x16x32xf32>
    %108 = tpu.matmul %106, %107, %cst_33 {dimension_numbers = #tpu.dot_dimension_numbers<[2], [1], [1], [2], [0, 0, 0, 1, 1, 2], [0], [0]>} : vector<4x16x16xbf16>, vector<4x16x32xbf16>, vector<4x16x32xf32> -> vector<4x16x32xf32>
    "tpu.trace_stop"() : () -> ()
    %cst_34 = arith.constant dense<0.000000e+00> : vector<16x32xf32>
    %109 = vector.multi_reduction <add>, %108, %cst_34 [0] : vector<4x16x32xf32> to vector<16x32xf32>
    %110 = vector.extract_strided_slice %26 {offsets = [3, 0], sizes = [1, 32], strides = [1, 1]} : vector<6x32xf32> to vector<1x32xf32>
    %111 = vector.broadcast %110 : vector<1x32xf32> to vector<16x32xf32>
    %112 = arith.addf %109, %111 : vector<16x32xf32>
    %cst_35 = arith.constant 0.000000e+00 : f32
    %113 = vector.broadcast %cst_35 : f32 to vector<16x32xf32>
    %114 = arith.maximumf %112, %113 : vector<16x32xf32>
    %115 = vector.extract_strided_slice %26 {offsets = [4, 0], sizes = [1, 32], strides = [1, 1]} : vector<6x32xf32> to vector<1x32xf32>
    %116 = arith.truncf %115 : vector<1x32xf32> to vector<1x32xbf16>
    %117 = arith.truncf %114 : vector<16x32xf32> to vector<16x32xbf16>
    "tpu.trace_start"() <{level = 10 : i32, message = "ok,nk->on"}> : () -> ()
    %cst_36 = arith.constant dense<0.000000e+00> : vector<1x16xf32>
    %118 = tpu.matmul %116, %117, %cst_36 {dimension_numbers = #tpu.dot_dimension_numbers<[1], [1], [0], [0], [0, 0, 1, 0], [], []>} : vector<1x32xbf16>, vector<16x32xbf16>, vector<1x16xf32> -> vector<1x16xf32>
    "tpu.trace_stop"() : () -> ()
    %119 = vector.extract_strided_slice %26 {offsets = [5, 0], sizes = [1, 1], strides = [1, 1]} : vector<6x32xf32> to vector<1x1xf32>
    %120 = vector.broadcast %119 : vector<1x1xf32> to vector<1x16xf32>
    %121 = arith.addf %118, %120 : vector<1x16xf32>
    %cst_37 = arith.constant 0.000000e+00 : f32
    %122 = vector.broadcast %cst_37 : f32 to vector<1x16xf32>
    %123 = arith.subf %122, %121 : vector<1x16xf32>
    %124 = math.exp %123 : vector<1x16xf32>
    %cst_38 = arith.constant 1.000000e+00 : f32
    %125 = vector.broadcast %cst_38 : f32 to vector<1x16xf32>
    %126 = arith.addf %125, %124 : vector<1x16xf32>
    %cst_39 = arith.constant 1.000000e+00 : f32
    %127 = vector.broadcast %cst_39 : f32 to vector<1x16xf32>
    %128 = arith.divf %127, %126 : vector<1x16xf32>
    %cst_40 = arith.constant dense<0xFF800000> : vector<1xf32>
    %129 = vector.multi_reduction <maximumf>, %128, %cst_40 [1] : vector<1x16xf32> to vector<1xf32>
    %130 = vector.shape_cast %129 : vector<1xf32> to vector<1x1xf32>
    %131 = vector.broadcast %130 : vector<1x1xf32> to vector<1x16xf32>
    %132 = arith.subf %128, %131 : vector<1x16xf32>
    %133 = math.exp %132 : vector<1x16xf32>
    %cst_41 = arith.constant dense<0.000000e+00> : vector<1xf32>
    %134 = vector.multi_reduction <add>, %133, %cst_41 [1] : vector<1x16xf32> to vector<1xf32>
    %135 = vector.shape_cast %134 : vector<1xf32> to vector<1x1xf32>
    %136 = vector.broadcast %135 : vector<1x1xf32> to vector<1x16xf32>
    %137 = arith.divf %133, %136 : vector<1x16xf32>
    %c0_42 = arith.constant 0 : index
    %c0_43 = arith.constant 0 : index
    %138 = vector.load %arg6[%c0_42, %c0_43] : memref<1x16xf32, #tpu.memory_space<vmem>>, vector<1x16xf32>
    tpu.vector_store %arg6[%c0_42, %c0_43], %137 {strides = array<i32>} : memref<1x16xf32, #tpu.memory_space<vmem>>, vector<1x16xf32>,
    return
  }
}

</mosaic_0001>

<bundles_post_ra>
// kernel: gnn_forward.1
= control target key start
LH: loop header
LB: loop body
LE: loop exit
PB: predicated region body
PF: predicated region fallthrough
CT: control target
= control target key end

     0   :  { %11 = vsyncpa [#allocation3], 0  ;;  %s1439_s0 = inlined_call_operand.vmem [shape: f32[16,32], index: 0, kind: input, shape index: {}]   ;;  %s1440_s1 = inlined_call_operand.vmem [shape: s32[2,32], index: 1, kind: input, shape index: {}]   ;;  %s1441_s2 = inlined_call_operand.vmem [shape: bf16[3,32,32], index: 2, kind: input, shape index: {}]   ;;  %s1442_s3 = inlined_call_operand.vmem [shape: bf16[8,1,32], index: 3, kind: input, shape index: {}]   ;;  %s1443_s4 = inlined_call_operand.hbm [shape: bf16[4,32,32], index: 4, kind: input, shape index: {}]   ;;  %s1444_s5 = inlined_call_operand.vmem [shape: f32[6,32], index: 5, kind: input, shape index: {}]   ;;  %s1445_s6 = inlined_call_operand.hbm [shape: f32[1,16], index: 6, kind: output, shape index: {}]  }
   0x1   :  { %12 = vsyncpa [#allocation4], 0  ;;  %s25_s23 = sshll.u32 %s1443_s4, 4  ;;  %s1205_s24 = smov [#allocation2]   ;;  %s26_s23 = int_to_ptr.hbm [resolvable:$true] %s25_s23 }
   0x2   :  { %s27_s25 = sshll.u32 %s1205_s24, 4  ;;  %s1206_s26 = smov 64   ;;  %s28_s25 = int_to_ptr.vmem [resolvable:$true] %s27_s25 }
   0x3   :  { %s1207_s27 = smov 4  }
   0x4   :  { %33 = dma.hbm_to_vmem [thread:$0]  %s26_s23, 1024, %s28_s25, [#allocation3], %s1206_s26, %s1206_s26, %s1207_s27  }
   0x5   :  { %1201 = dma.done.wait [#allocation3], 1024  }
   0x6   :  { %1202 = vsyncadd [#allocation3], 4294966272  ;;  %v42_v0 = vlaneseq  ;;  %v41_v3 = vld [vmem:[%s1440_s1] sm:$0x3]  ;;  %v1087_v4 = vld [vmem:[%s1441_s2 + $0x8] sm:$0xff]  ;;  %vm59_vm0 = vcmask 261120  }
   0x7   :  { %v45_v5 = vperm.slane %v41_v3, 0  ;;  %v52_v6 = vperm.slane %v41_v3, 1  ;;  %172 = vmatpush.bf16.msra.mxu1 %v1087_v4  ;;  %v1208_v7 = vmov 0.0   ;;  %v1086_v12 = vld [vmem:[%s1441_s2] sm:$0xff]  ;;  %v149_v14 = vld [vmem:[%s1439_s0 + $0x8] sm:$0xff]  ;;  %vm108_vm7 = vcmask 130048  }
   0x8   :  { %v43_v1 = vshrl.u32 %v42_v0, 7  ;;  %v148_v13 = vld [vmem:[%s1439_s0] sm:$0xff]  ;;  %v96_v16 = vand.u32 127, %v42_v0  ;;  %v1089_v47 = vld [vmem:[%s1441_s2 + $0x18] sm:$0xff]  ;;  %v1088_v48 = vld [vmem:[%s1441_s2 + $0x10] sm:$0xff]  ;;  %s987_s0 = sshll.u32 %s1445_s6, 4  ;;  %s988_s0 = int_to_ptr.hbm [resolvable:$true] %s987_s0 }
   0x9   :  { %v150_v15 = vpack.c.bf16 %v149_v14, %v148_v13  ;;  %229 = vmatpush.bf16.msra.mxu3 %v1089_v47  ;;  %v1302_v50 = vld [vmem:[%s1444_s5] sm:$0x3f] }
   0xa   :  { %v44_v2 = vadd.s32 8, %v43_v1  ;;  %vm46_vm2 = vcmp.eq.s32.totalorder %v43_v1, %v45_v5  ;;  %vm53_vm3 = vcmp.eq.s32.totalorder %v43_v1, %v52_v6  ;;  %vm99_vm5 = vcmp.eq.s32.totalorder %v43_v1, %v96_v16  ;;  %v1091_v1 = vld [vmem:[%s1441_s2 + $0x28] sm:$0xff]  ;;  %v1092_v47 = vld [vmem:[#allocation2] sm:$0xff] }
   0xb   :  { %v997_v9 = vsel %vm46_vm2, 1.0, %v1208_v7  ;;  %v999_v10 = vsel %vm53_vm3, 1.0, %v1208_v7  ;;  %173 = vmatpush.bf16.msra.mxu1 %v1086_v12  ;;  %v202_v52 = vperm.slane %v1302_v50, 0 }
   0xc   :  { %vm47_vm1 = vcmp.eq.s32.totalorder %v44_v2, %v45_v5  ;;  %vm54_vm4 = vcmp.eq.s32.totalorder %v44_v2, %v52_v6  ;;  %vm100_vm9 = vcmp.eq.s32.totalorder %v44_v2, %v96_v16  ;;  %v1090_v2 = vld [vmem:[%s1441_s2 + $0x20] sm:$0xff]  ;;  %v256_v5 = vperm.slane %v1302_v50, 1 }
   0xd   :  { %v998_v8 = vsel %vm47_vm1, 1.0, %v1208_v7  ;;  %v1000_v11 = vsel %vm54_vm4, 1.0, %v1208_v7  ;;  %230 = vmatpush.bf16.msra.mxu3 %v1088_v48  ;;  %v1094_v48 = vld [vmem:[#allocation2 + $0x10] sm:$0xff] }
   0xe   :  { %1001 = vmatpush.xpose.msk.msra.mxu0 %vm59_vm0, %v998_v8  ;;  %1015 = vmatmul.msk.bf16.vlgmr.msra.gmra.mxu1 %vm59_vm0, %v150_v15 }
  0x12   :  { %1002 = vmatpush.xpose.msk.msra.mxu0 %vm59_vm0, %v997_v9 }
  0x15   :  { %1003 = vmatmul.msk.f32.vlgmr.msra.gmra.mxu0 %vm59_vm0, %v999_v10 }
  0x16   :  { %283 = vmatpush.bf16.msrb.mxu0 %v1091_v1 }
  0x1a   :  { %284 = vmatpush.bf16.msrb.mxu0 %v1090_v2 }
  0x1d   :  { %1004 = vmatmul.msk.f32.gmra.mxu0 %vm59_vm0, %v1000_v11 }
  0x8b   :  { %v175_v35 = vpop.f32.mrf.mxu1 }
  0x92   :  { %v89_v17 = vpop.f32.mrf.mxu0 }
  0x93   :  { %vm97_vm6 = vcmp.gt.f32.partialorder %v89_v17, 0.5  ;;  %v177_v43 = vpop.f32.mrf.mxu1 }
  0x94   :  { %vm1269_vm8 = vmor %vm97_vm6, %vm99_vm5 }
  0x95   :  { %v1005_v19 = vsel %vm1269_vm8, 1.0, %v1208_v7 }
  0x96   :  { %v109_v20 = vsel %vm108_vm7, %v1005_v19, 0.0 }
  0x97   :  { %110 = vadd.xlane.f32.xlu0 %v109_v20  ;;  %v318_v20 = vld [vmem:[%s1442_s3 + $0x1] sm:$0x1] }
  0x9a   :  { %v92_v21 = vpop.f32.mrf.mxu0 }
  0x9b   :  { %vm98_vm10 = vcmp.gt.f32.partialorder %v92_v21, 0.5  ;;  %v319_v21 = vld [vmem:[%s1442_s3 + $0x2] sm:$0x1] }
  0x9c   :  { %vm1276_vm11 = vmor %vm98_vm10, %vm100_vm9 }
  0x9d   :  { %v1006_v23 = vsel %vm1276_vm11, 1.0, %v1208_v7 }
  0x9e   :  { %v112_v24 = vsel %vm108_vm7, %v1006_v23, 0.0  ;;  %v1283_v25 = vpack.c.bf16 %v1006_v23, %v1005_v19  ;;  %v317_v19 = vld [vmem:[%s1442_s3] sm:$0x1] }
  0x9f   :  { %113 = vadd.xlane.f32.xlu0 %v112_v24  ;;  %v334_v23 = vsel %vm59_vm0, %v317_v19, 0  ;;  %v351_v24 = vsel %vm59_vm0, %v318_v20, 0 }
  0xa0   :  { %343 = vmatpush.bf16.xpose.msrb.mxu3 %v334_v23 }
 0x10a   :  { %v111_v26 = vpop.xlane.xlu0 %110 }
 0x10b   :  { %1109 = vrsqrt.f32 %v111_v26  ;;  %vm121_vm13 = vweird.f32 %v111_v26 }
 0x111   :  { %v1110_v27 = vpop.eup %1109 }
 0x112   :  { %v116_v28 = vmul.f32 %v1110_v27, %v111_v26  ;;  %v114_v29 = vpop.xlane.xlu0 %113  ;;  %vm122_vm12 = vweird.f32 %v1110_v27  ;;  %v368_v26 = vsel %vm59_vm0, %v319_v21, 0 }
 0x113   :  { %1111 = vrsqrt.f32 %v114_v29  ;;  %vm123_vm15 = vmor %vm121_vm13, %vm122_vm12  ;;  %vm131_vm1 = vweird.f32 %v114_v29  ;;  %377 = vmatpush.bf16.xpose.msra.mxu0 %v368_v26 }
 0x114   :  { %v117_v30 = vmul.f32 %v1110_v27, %v116_v28 }
 0x116   :  { %v118_v31 = vmul.f32 0.5, %v117_v30  ;;  %v310_v30 = vperm.slane %v1302_v50, 2 }
 0x118   :  { %v119_v33 = vsub.f32 1.5, %v118_v31 }
 0x119   :  { %v1112_v32 = vpop.eup %1111 }
 0x11a   :  { %v126_v34 = vmul.f32 %v1112_v32, %v114_v29  ;;  %v120_v37 = vmul.f32 %v1110_v27, %v119_v33  ;;  %vm132_vm14 = vweird.f32 %v1112_v32 }
 0x11b   :  { %vm133_vm2 = vmor %vm131_vm1, %vm132_vm14 }
 0x11c   :  { %v127_v36 = vmul.f32 %v1112_v32, %v126_v34  ;;  %v1285_v40 = vsel %vm123_vm15, %v1110_v27, %v120_v37 }
 0x11d   :  { %v180_v44 = vmul.f32 %v175_v35, %v1285_v40 }
 0x11e   :  { %v128_v38 = vmul.f32 0.5, %v127_v36 }
 0x120   :  { %v129_v39 = vsub.f32 1.5, %v128_v38 }
 0x122   :  { %v130_v41 = vmul.f32 %v1112_v32, %v129_v39 }
 0x124   :  { %v1287_v42 = vsel %vm133_vm2, %v1112_v32, %v130_v41 }
 0x125   :  { %v181_v45 = vmul.f32 %v177_v43, %v1287_v42 }
 0x127   :  { %v182_v46 = vpack.c.bf16 %v181_v45, %v180_v44  ;;  %v1093_v44 = vld [vmem:[#allocation2 + $0x8] sm:$0xff]  ;;  %v1095_v45 = vld [vmem:[#allocation2 + $0x18] sm:$0xff] }
 0x129   :  { %193 = vmatpush.bf16.msra.mxu2 %v182_v46  ;;  %v1099_v46 = vld [vmem:[#allocation2 + $0x38] sm:$0xff] }
 0x12c   :  { %1016 = vmatmul.msk.bf16.vlgmr.msra.gmra.mxu2 %vm108_vm7, %v1283_v25 }
 0x1af   :  { %v195_v49 = vpop.f32.mrf.mxu2 }
 0x1b0   :  { %v200_v51 = vmul.f32 %v195_v49, %v1285_v40  ;;  %v1096_v49 = vld [vmem:[#allocation2 + $0x20] sm:$0xff] }
 0x1b2   :  { %v203_v54 = vadd.f32 %v202_v52, %v200_v51  ;;  %v1098_v51 = vld [vmem:[#allocation2 + $0x30] sm:$0xff] }
 0x1b4   :  { %v205_v57 = vmax.f32 %v203_v54, 0.0  ;;  %v322_v54 = vld [vmem:[%s1442_s3 + $0x5] sm:$0x1] }
 0x1b7   :  { %v197_v53 = vpop.f32.mrf.mxu2 }
 0x1b8   :  { %v201_v55 = vmul.f32 %v197_v53, %v1287_v42  ;;  %v321_v53 = vld [vmem:[%s1442_s3 + $0x4] sm:$0x1] }
 0x1ba   :  { %v204_v56 = vadd.f32 %v202_v52, %v201_v55  ;;  %v1209_v52 = vmov 0   ;;  %v323_v55 = vld [vmem:[%s1442_s3 + $0x6] sm:$0x1] }
 0x1bb   :  { %1106 = vset.pattern.permute.xlu0 %v1209_v52  ;;  %1108 = vset.pattern.permute.xlu2 %v1209_v52 }
 0x1bc   :  { %v206_v58 = vmax.f32 %v204_v56, 0.0  ;;  %1107 = vset.pattern.permute.xlu1 %v1209_v52  ;;  %v324_v56 = vld [vmem:[%s1442_s3 + $0x7] sm:$0x1] }
 0x1be   :  { %v207_v59 = vpack.c.bf16 %v206_v58, %v205_v57 }
 0x1c0   :  { %1025 = vmatmul.msk.bf16.vlgmr.msra.gmra.mxu3 %vm59_vm0, %v207_v59 }
 0x243   :  { %v232_v60 = vpop.f32.mrf.mxu3 }
 0x244   :  { %v237_v62 = vmul.f32 %v232_v60, %v1285_v40 }
 0x24b   :  { %v234_v61 = vpop.f32.mrf.mxu3 }
 0x24c   :  { %v238_v63 = vmul.f32 %v234_v61, %v1287_v42 }
 0x24e   :  { %v239_v0 = vpack.c.bf16 %v238_v63, %v237_v62 }
 0x250   :  { %247 = vmatpush.bf16.msrb.mxu2 %v239_v0 }
 0x253   :  { %1026 = vmatmul.msk.bf16.vlgmr.msrb.gmra.mxu2 %vm108_vm7, %v1283_v25 }
 0x254   :  { %360 = vmatpush.bf16.xpose.msra.mxu2 %v351_v24 }
 0x2d6   :  { %v249_v3 = vpop.f32.mrf.mxu2 }
 0x2d7   :  { %v254_v4 = vmul.f32 %v249_v3, %v1285_v40 }
 0x2d9   :  { %v257_v7 = vadd.f32 %v256_v5, %v254_v4 }
 0x2db   :  { %v259_v10 = vmax.f32 %v257_v7, 0.0 }
 0x2de   :  { %v251_v6 = vpop.f32.mrf.mxu2 }
 0x2df   :  { %v255_v8 = vmul.f32 %v251_v6, %v1287_v42 }
 0x2e1   :  { %v258_v9 = vadd.f32 %v256_v5, %v255_v8 }
 0x2e3   :  { %v260_v11 = vmax.f32 %v258_v9, 0.0 }
 0x2e5   :  { %v261_v12 = vpack.c.bf16 %v260_v11, %v259_v10 }
 0x2e7   :  { %1035 = vmatmul.msk.bf16.vlgmr.msrb.gmra.mxu0 %vm59_vm0, %v261_v12 }
 0x364   :  { %v286_v13 = vpop.f32.mrf.mxu0 }
 0x365   :  { %v291_v15 = vmul.f32 %v286_v13, %v1285_v40 }
 0x36c   :  { %v288_v14 = vpop.f32.mrf.mxu0 }
 0x36d   :  { %v292_v16 = vmul.f32 %v288_v14, %v1287_v42 }
 0x36f   :  { %v293_v17 = vpack.c.bf16 %v292_v16, %v291_v15 }
 0x371   :  { %301 = vmatpush.bf16.msrb.mxu1 %v293_v17 }
 0x374   :  { %1036 = vmatmul.msk.bf16.vlgmr.msrb.gmra.mxu1 %vm108_vm7, %v1283_v25  ;;  %v320_v25 = vld [vmem:[%s1442_s3 + $0x3] sm:$0x1]  ;;  %s1210_s3 = smov [#allocation5]  }
 0x375   :  { %v385_v27 = vsel %vm59_vm0, %v320_v25, 0  ;;  %s985_s9 = sshll.u32 %s1210_s3, 4  ;;  %s986_s9 = int_to_ptr.vmem [resolvable:$true] %s985_s9 }
 0x376   :  { %394 = vmatpush.bf16.xpose.msra.mxu1 %v385_v27 }
 0x3f1   :  { %v303_v28 = vpop.f32.mrf.mxu1 }
 0x3f2   :  { %v308_v29 = vmul.f32 %v303_v28, %v1285_v40 }
 0x3f4   :  { %v311_v31 = vadd.f32 %v310_v30, %v308_v29 }
 0x3f6   :  { %v313_v33 = vmax.f32 %v311_v31, 0.0 }
 0x3f8   :  { %v315_v36 = vpack.c.bf16 %v313_v33, %v313_v33 }
 0x3f9   :  { %v305_v32 = vpop.f32.mrf.mxu1 }
 0x3fa   :  { %v309_v34 = vmul.f32 %v305_v32, %v1287_v42  ;;  %v327_v39 = vunpack.c.l.b16 %v315_v36  ;;  %v1097_v42 = vld [vmem:[#allocation2 + $0x28] sm:$0xff] }
 0x3fc   :  { %v312_v35 = vadd.f32 %v310_v30, %v309_v34 }
 0x3fe   :  { %v314_v37 = vmax.f32 %v312_v35, 0.0 }
 0x400   :  { %v316_v38 = vpack.c.bf16 %v314_v37, %v314_v37 }
 0x402   :  { %v328_v41 = vunpack.c.l.b16 %v316_v38 }
 0x404   :  { %v329_v43 = vpack.c.b16 %v328_v41, %v327_v39 }
 0x406   :  { %1037 = vmatmul.msk.bf16.vlgmr.msrb.gmra.mxu3 %vm59_vm0, %v329_v43  ;;  %1038 = vmatmul.msk.bf16.vlgmr.msra.gmra.mxu2 %vm59_vm0, %v329_v43  ;;  %v331_v40 = vsel %vm59_vm0, %v329_v43, 0 }
 0x407   :  { %1039 = vmatmul.msk.bf16.vlgmr.msra.gmra.mxu0 %vm59_vm0, %v329_v43  ;;  %1040 = vmatmul.msk.bf16.vlgmr.msra.gmra.mxu1 %vm59_vm0, %v329_v43 }
 0x408   :  { %411 = vmatpush.bf16.xpose.msra.mxu3 %v331_v40  ;;  %427 = vmatpush.bf16.xpose.msrb.mxu2 %v331_v40 }
 0x409   :  { %443 = vmatpush.bf16.xpose.msrb.mxu0 %v331_v40  ;;  %459 = vmatpush.bf16.xpose.msrb.mxu1 %v331_v40 }
 0x410   :  { %673 = vmatpush.bf16.msrb.mxu3 %v1093_v44  ;;  %699 = vmatpush.bf16.msra.mxu2 %v1095_v45 }
 0x411   :  { %725 = vmatpush.bf16.msra.mxu0 %v1097_v42  ;;  %751 = vmatpush.bf16.msra.mxu1 %v1099_v46 }
 0x414   :  { %674 = vmatpush.bf16.msrb.mxu3 %v1092_v47  ;;  %700 = vmatpush.bf16.msra.mxu2 %v1094_v48 }
 0x415   :  { %726 = vmatpush.bf16.msra.mxu0 %v1096_v49  ;;  %752 = vmatpush.bf16.msra.mxu1 %v1098_v51 }
 0x416   :  { %1041 = vmatmul.msk.bf16.vlgmr.msra.gmra.mxu3 %vm59_vm0, %v321_v53  ;;  %1042 = vmatmul.msk.bf16.vlgmr.msrb.gmra.mxu2 %vm59_vm0, %v322_v54 }
 0x417   :  { %1043 = vmatmul.msk.bf16.vlgmr.msrb.gmra.mxu0 %vm59_vm0, %v323_v55  ;;  %1044 = vmatmul.msk.bf16.vlgmr.msrb.gmra.mxu1 %vm59_vm0, %v324_v56 }
 0x426   :  { %1053 = vmatmul.msk.bf16.vlgmr.msrb.gmra.mxu3 %vm59_vm0, %v329_v43  ;;  %1062 = vmatmul.msk.bf16.vlgmr.msra.gmra.mxu2 %vm59_vm0, %v329_v43 }
 0x427   :  { %1071 = vmatmul.msk.bf16.vlgmr.msra.gmra.mxu0 %vm59_vm0, %v329_v43  ;;  %1080 = vmatmul.msk.bf16.vlgmr.msra.gmra.mxu1 %vm59_vm0, %v329_v43 }
 0x484   :  { %v379_v57 = vpop.f32.mrf.mxu0  ;;  %v396_v58 = vpop.f32.mrf.mxu1 }
 0x485   :  { %487 = vperm.xlu0 %1106, %v379_v57  }
 0x489   :  { %v345_v59 = vpop.f32.mrf.mxu3  ;;  %v362_v60 = vpop.f32.mrf.mxu2 }
 0x48a   :  { %477 = vperm.xlu2 %1108, %v362_v60   ;;  %467 = vperm.xlu1 %1107, %v345_v59  }
 0x48c   :  { %v381_v61 = vpop.f32.mrf.mxu0  ;;  %v398_v62 = vpop.f32.mrf.mxu1 }
 0x491   :  { %v347_v63 = vpop.f32.mrf.mxu3  ;;  %v364_v0 = vpop.f32.mrf.mxu2 }
 0x492   :  { %482 = vperm.xlu2 %1108, %v364_v0   ;;  %472 = vperm.xlu1 %1107, %v347_v63  }
 0x494   :  { %v1370_v1 = vpop.f32.mrf.mxu0  ;;  %v1372_v2 = vpop.f32.mrf.mxu1 }
 0x495   :  { %v507_v53 = vperm.slane %v1370_v1, 0  ;;  %v508_v1 = vperm.slane %v1372_v2, 0 }
 0x499   :  { %v1374_v3 = vpop.f32.mrf.mxu3  ;;  %v429_v4 = vpop.f32.mrf.mxu2 }
 0x49a   :  { %497 = vperm.xlu2 %1108, %v396_v58   ;;  %492 = vperm.xlu1 %1107, %v381_v61   ;;  %v506_v39 = vperm.slane %v429_v4, 0  ;;  %v505_v46 = vperm.slane %v1374_v3, 0 }
 0x49c   :  { %v447_v5 = vpop.f32.mrf.mxu0  ;;  %v463_v6 = vpop.f32.mrf.mxu1 }
 0x4a1   :  { %v415_v7 = vpop.f32.mrf.mxu3  ;;  %v431_v8 = vpop.f32.mrf.mxu2 }
 0x4a2   :  { %502 = vperm.xlu1 %1107, %v398_v62  }
 0x4a4   :  { %v728_v9 = vpop.f32.mrf.mxu0  ;;  %v754_v10 = vpop.f32.mrf.mxu1 }
 0x4a5   :  { %v771_v13 = vpack.c.bf16 %v728_v9, %v728_v9  ;;  %v773_v14 = vpack.c.bf16 %v754_v10, %v754_v10 }
 0x4a7   :  { %v838_v20 = vunpack.c.l.b16 %v771_v13  ;;  %v866_v21 = vunpack.c.l.b16 %v773_v14 }
 0x4a9   :  { %v676_v11 = vpop.f32.mrf.mxu3  ;;  %v702_v12 = vpop.f32.mrf.mxu2 }
 0x4aa   :  { %v767_v26 = vpack.c.bf16 %v676_v11, %v676_v11  ;;  %v769_v25 = vpack.c.bf16 %v702_v12, %v702_v12 }
 0x4ac   :  { %v730_v15 = vpop.f32.mrf.mxu0  ;;  %v756_v16 = vpop.f32.mrf.mxu1  ;;  %v782_v33 = vunpack.c.l.b16 %v767_v26  ;;  %v810_v34 = vunpack.c.l.b16 %v769_v25 }
 0x4ad   :  { %v772_v17 = vpack.c.bf16 %v730_v15, %v730_v15  ;;  %v774_v19 = vpack.c.bf16 %v756_v16, %v756_v16 }
 0x4af   :  { %v839_v23 = vunpack.c.l.b16 %v772_v17  ;;  %v867_v24 = vunpack.c.l.b16 %v774_v19 }
 0x4b1   :  { %v840_v27 = vpack.c.b16 %v839_v23, %v838_v20  ;;  %v868_v28 = vpack.c.b16 %v867_v24, %v866_v21  ;;  %v678_v29 = vpop.f32.mrf.mxu3  ;;  %v704_v30 = vpop.f32.mrf.mxu2 }
 0x4b2   :  { %v768_v31 = vpack.c.bf16 %v678_v29, %v678_v29  ;;  %v770_v32 = vpack.c.bf16 %v704_v30, %v704_v30 }
 0x4b3   :  { %852 = vmatpush.bf16.msrb.mxu0 %v840_v27  ;;  %880 = vmatpush.bf16.msrb.mxu1 %v868_v28 }
 0x4b4   :  { %v783_v35 = vunpack.c.l.b16 %v768_v31  ;;  %v811_v36 = vunpack.c.l.b16 %v770_v32 }
 0x4b6   :  { %v784_v37 = vpack.c.b16 %v783_v35, %v782_v33  ;;  %v812_v38 = vpack.c.b16 %v811_v36, %v810_v34 }
 0x4b8   :  { %796 = vmatpush.bf16.msra.mxu3 %v784_v37  ;;  %824 = vmatpush.bf16.msrb.mxu2 %v812_v38 }
 0x4e4   :  { %v478_v41 = vpop.permute.xlu2 %477 }
 0x4e5   :  { %v511_v43 = vadd.f32 %v506_v39, %v478_v41 }
 0x4e7   :  { %v527_v40 = vmul.f32 0.2, %v511_v43  ;;  %vm519_vm3 = vcmp.gt.f32.partialorder %v511_v43, 0.0 }
 0x4e9   :  { %v535_v44 = vsel %vm519_vm3, %v511_v43, %v527_v40 }
 0x4ea   :  { %v1378_v45 = vsel %vm1269_vm8, %v535_v44, -1e+30 }
 0x4eb   :  { %v557_v42 = vsel %vm108_vm7, %v1378_v45, -inf }
 0x4ec   :  { %558 = vmax.xlane.f32.xlu0 %v557_v42  ;;  %v483_v47 = vpop.permute.xlu2 %482 }
 0x4ed   :  { %v512_v49 = vadd.f32 %v506_v39, %v483_v47 }
 0x4ef   :  { %v528_v54 = vmul.f32 0.2, %v512_v49  ;;  %vm520_vm5 = vcmp.gt.f32.partialorder %v512_v49, 0.0 }
 0x4f1   :  { %v536_v62 = vsel %vm520_vm5, %v512_v49, %v528_v54 }
 0x4f2   :  { %v546_v0 = vsel %vm1276_vm11, %v536_v62, -1e+30 }
 0x4f3   :  { %v560_v8 = vsel %vm108_vm7, %v546_v0, -inf }
 0x4f4   :  { %v498_v5 = vpop.permute.xlu2 %497 }
 0x4f5   :  { %v515_v10 = vadd.f32 %v508_v1, %v498_v5 }
 0x4f7   :  { %v488_v56 = vpop.permute.xlu0 %487  ;;  %v531_v14 = vmul.f32 0.2, %v515_v10  ;;  %vm523_vm12 = vcmp.gt.f32.partialorder %v515_v10, 0.0 }
 0x4f8   :  { %v513_v60 = vadd.f32 %v507_v53, %v488_v56 }
 0x4f9   :  { %v539_v23 = vsel %vm523_vm12, %v515_v10, %v531_v14 }
 0x4fa   :  { %v529_v3 = vmul.f32 0.2, %v513_v60  ;;  %vm521_vm9 = vcmp.gt.f32.partialorder %v513_v60, 0.0  ;;  %v549_v26 = vsel %vm1269_vm8, %v539_v23, -1e+30 }
 0x4fb   :  { %v569_v29 = vsel %vm108_vm7, %v549_v26, -inf }
 0x4fc   :  { %v468_v48 = vpop.permute.xlu1 %467  ;;  %v537_v12 = vsel %vm521_vm9, %v513_v60, %v529_v3 }
 0x4fd   :  { %v509_v51 = vadd.f32 %v505_v46, %v468_v48  ;;  %v547_v2 = vsel %vm1269_vm8, %v537_v12, -1e+30 }
 0x4fe   :  { %v563_v19 = vsel %vm108_vm7, %v547_v2, -inf }
 0x4ff   :  { %v525_v52 = vmul.f32 0.2, %v509_v51  ;;  %vm517_vm4 = vcmp.gt.f32.partialorder %v509_v51, 0.0 }
 0x501   :  { %v533_v55 = vsel %vm517_vm4, %v509_v51, %v525_v52 }
 0x502   :  { %v543_v57 = vsel %vm1269_vm8, %v533_v55, -1e+30 }
 0x503   :  { %v551_v58 = vsel %vm108_vm7, %v543_v57, -inf }
 0x504   :  { %v473_v59 = vpop.permute.xlu1 %472  ;;  %552 = vmax.xlane.f32.xlu2 %v551_v58 }
 0x505   :  { %v510_v61 = vadd.f32 %v505_v46, %v473_v59 }
 0x507   :  { %v526_v63 = vmul.f32 0.2, %v510_v61  ;;  %vm518_vm6 = vcmp.gt.f32.partialorder %v510_v61, 0.0 }
 0x509   :  { %v534_v4 = vsel %vm518_vm6, %v510_v61, %v526_v63 }
 0x50a   :  { %v544_v6 = vsel %vm1276_vm11, %v534_v4, -1e+30 }
 0x50b   :  { %v554_v7 = vsel %vm108_vm7, %v544_v6, -inf }
 0x50c   :  { %v493_v9 = vpop.permute.xlu1 %492  ;;  %555 = vmax.xlane.f32.xlu1 %v554_v7  ;;  %561 = vmax.xlane.f32.xlu2 %v560_v8 }
 0x50d   :  { %v514_v11 = vadd.f32 %v507_v53, %v493_v9 }
 0x50f   :  { %v530_v13 = vmul.f32 0.2, %v514_v11  ;;  %vm522_vm10 = vcmp.gt.f32.partialorder %v514_v11, 0.0 }
 0x511   :  { %v538_v15 = vsel %vm522_vm10, %v514_v11, %v530_v13 }
 0x512   :  { %v548_v16 = vsel %vm1276_vm11, %v538_v15, -1e+30 }
 0x513   :  { %v566_v17 = vsel %vm108_vm7, %v548_v16, -inf }
 0x514   :  { %v503_v20 = vpop.permute.xlu1 %502  ;;  %567 = vmax.xlane.f32.xlu1 %v566_v17  ;;  %564 = vmax.xlane.f32.xlu2 %v563_v19 }
 0x515   :  { %v516_v21 = vadd.f32 %v508_v1, %v503_v20 }
 0x517   :  { %v532_v24 = vmul.f32 0.2, %v516_v21  ;;  %vm524_vm13 = vcmp.gt.f32.partialorder %v516_v21, 0.0 }
 0x519   :  { %v540_v25 = vsel %vm524_vm13, %v516_v21, %v532_v24 }
 0x51a   :  { %v550_v27 = vsel %vm1276_vm11, %v540_v25, -1e+30  ;;  %vm954_vm11 = vcmask 122880  }
 0x51b   :  { %v572_v28 = vsel %vm108_vm7, %v550_v27, -inf }
 0x51c   :  { %573 = vmax.xlane.f32.xlu1 %v572_v28  ;;  %570 = vmax.xlane.f32.xlu2 %v569_v29 }
 0x55f   :  { %v559_v30 = vpop.xlane.xlu0 %558 }
 0x560   :  { %v577_v33 = vsub.f32 %v1378_v45, %v559_v30 }
 0x562   :  { %v587_v35 = vmul.f32 1.442695, %v577_v33 }
 0x577   :  { %v553_v31 = vpop.xlane.xlu2 %552 }
 0x578   :  { %v575_v32 = vsub.f32 %v543_v57, %v553_v31 }
 0x57a   :  { %v583_v34 = vmul.f32 1.442695, %v575_v32 }
 0x57c   :  { %1113 = vpow2.f32 %v583_v34 }
 0x57d   :  { %1115 = vpow2.f32 %v587_v35 }
 0x57f   :  { %v556_v18 = vpop.xlane.xlu1 %555  ;;  %v562_v36 = vpop.xlane.xlu2 %561 }
 0x580   :  { %v576_v37 = vsub.f32 %v544_v6, %v556_v18  ;;  %v578_v38 = vsub.f32 %v546_v0, %v562_v36 }
 0x582   :  { %v1114_v22 = vpop.eup %1113  ;;  %v585_v39 = vmul.f32 1.442695, %v576_v37  ;;  %v589_v41 = vmul.f32 1.442695, %v578_v38 }
 0x583   :  { %v599_v43 = vsel %vm108_vm7, %v1114_v22, 0.0  ;;  %v1116_v42 = vpop.eup %1115 }
 0x584   :  { %1117 = vpow2.f32 %v585_v39  ;;  %600 = vadd.xlane.f32.xlu2 %v599_v43  ;;  %v605_v53 = vsel %vm108_vm7, %v1116_v42, 0.0 }
 0x585   :  { %1119 = vpow2.f32 %v589_v41 }
 0x587   :  { %v568_v40 = vpop.xlane.xlu1 %567  ;;  %v565_v44 = vpop.xlane.xlu2 %564 }
 0x588   :  { %v580_v45 = vsub.f32 %v548_v16, %v568_v40  ;;  %v579_v46 = vsub.f32 %v547_v2, %v565_v44 }
 0x58a   :  { %v1118_v47 = vpop.eup %1117  ;;  %v593_v48 = vmul.f32 1.442695, %v580_v45  ;;  %v591_v49 = vmul.f32 1.442695, %v579_v46 }
 0x58b   :  { %v1120_v51 = vpop.eup %1119  ;;  %v602_v52 = vsel %vm108_vm7, %v1118_v47, 0.0 }
 0x58c   :  { %1121 = vpow2.f32 %v593_v48  ;;  %603 = vadd.xlane.f32.xlu1 %v602_v52  ;;  %606 = vadd.xlane.f32.xlu2 %v605_v53  ;;  %v608_v54 = vsel %vm108_vm7, %v1120_v51, 0.0 }
 0x58d   :  { %1123 = vpow2.f32 %v591_v49  ;;  %609 = vadd.xlane.f32.xlu0 %v608_v54 }
 0x58f   :  { %v574_v55 = vpop.xlane.xlu1 %573  ;;  %v571_v56 = vpop.xlane.xlu2 %570 }
 0x590   :  { %v582_v57 = vsub.f32 %v550_v27, %v574_v55  ;;  %v581_v58 = vsub.f32 %v549_v26, %v571_v56 }
 0x592   :  { %v1122_v59 = vpop.eup %1121  ;;  %v597_v60 = vmul.f32 1.442695, %v582_v57  ;;  %v595_v61 = vmul.f32 1.442695, %v581_v58 }
 0x593   :  { %v1124_v62 = vpop.eup %1123  ;;  %v614_v63 = vsel %vm108_vm7, %v1122_v59, 0.0 }
 0x594   :  { %1125 = vpow2.f32 %v597_v60  ;;  %615 = vadd.xlane.f32.xlu2 %v614_v63  ;;  %v611_v0 = vsel %vm108_vm7, %v1124_v62, 0.0 }
 0x595   :  { %1127 = vpow2.f32 %v595_v61  ;;  %612 = vadd.xlane.f32.xlu1 %v611_v0 }
 0x59a   :  { %v1126_v1 = vpop.eup %1125 }
 0x59b   :  { %v1128_v3 = vpop.eup %1127  ;;  %v620_v4 = vsel %vm108_vm7, %v1126_v1, 0.0 }
 0x59c   :  { %v617_v5 = vsel %vm108_vm7, %v1128_v3, 0.0 }
 0x59d   :  { %621 = vadd.xlane.f32.xlu1 %v620_v4  ;;  %618 = vadd.xlane.f32.xlu0 %v617_v5  ;;  %v901_v5 = vperm.slane %v1302_v50, 3 }
 0x5ac   :  { %910 = vperm.xlu2 %1108, %v1302_v50  }
 0x5f7   :  { %v601_v6 = vpop.xlane.xlu2 %600 }
 0x5f8   :  { %1129 = vrcp.f32 %v601_v6 }
 0x5fe   :  { %v1130_v9 = vpop.eup %1129 }
 0x5ff   :  { %v604_v7 = vpop.xlane.xlu1 %603  ;;  %v607_v8 = vpop.xlane.xlu2 %606  ;;  %v631_v11 = vmul.f32 %v1130_v9, %v1114_v22 }
 0x600   :  { %1131 = vrcp.f32 %v604_v7  ;;  %v610_v10 = vpop.xlane.xlu0 %609 }
 0x601   :  { %1133 = vrcp.f32 %v610_v10  ;;  %v759_v2 = vpack.c.bf16 %v631_v11, %v631_v11 }
 0x602   :  { %1135 = vrcp.f32 %v607_v8 }
 0x603   :  { %v777_v24 = vunpack.c.l.b16 %v759_v2 }
 0x606   :  { %v1132_v12 = vpop.eup %1131 }
 0x607   :  { %v1134_v13 = vpop.eup %1133  ;;  %v632_v14 = vmul.f32 %v1132_v12, %v1118_v47  ;;  %v616_v15 = vpop.xlane.xlu2 %615 }
 0x608   :  { %v1136_v16 = vpop.eup %1135  ;;  %v634_v17 = vmul.f32 %v1134_v13, %v1120_v51  ;;  %v613_v19 = vpop.xlane.xlu1 %612  ;;  %1137 = vrcp.f32 %v616_v15  ;;  %v906_v15 = vpack.c.bf16 %v1302_v50, %v1302_v50 }
 0x609   :  { %v760_v20 = vpack.c.bf16 %v632_v14, %v632_v14  ;;  %v633_v21 = vmul.f32 %v1136_v16, %v1116_v42  ;;  %1139 = vrcp.f32 %v613_v19 }
 0x60a   :  { %v762_v23 = vpack.c.bf16 %v634_v17, %v634_v17  ;;  %v913_v16 = vrot.slane %v906_v15, 2 }
 0x60b   :  { %v778_v26 = vunpack.c.l.b16 %v760_v20  ;;  %v761_v25 = vpack.c.bf16 %v633_v21, %v633_v21 }
 0x60c   :  { %v806_v27 = vunpack.c.l.b16 %v762_v23 }
 0x60d   :  { %v779_v28 = vpack.c.b16 %v778_v26, %v777_v24  ;;  %v805_v29 = vunpack.c.l.b16 %v761_v25 }
 0x60e   :  { %v1138_v30 = vpop.eup %1137 }
 0x60f   :  { %v1140_v31 = vpop.eup %1139  ;;  %v807_v32 = vpack.c.b16 %v806_v27, %v805_v29  ;;  %v636_v33 = vmul.f32 %v1138_v30, %v1122_v59  ;;  %1081 = vmatmul.msk.bf16.vlgmr.msra.gmra.mxu3 %vm108_vm7, %v779_v28  ;;  %v911_v17 = vpop.permute.xlu2 %910 }
 0x610   :  { %v635_v34 = vmul.f32 %v1140_v31, %v1124_v62  ;;  %v622_v35 = vpop.xlane.xlu1 %621  ;;  %v619_v18 = vpop.xlane.xlu0 %618  ;;  %v914_v19 = vrot.slane %v911_v17, 5 }
 0x611   :  { %v764_v36 = vpack.c.bf16 %v636_v33, %v636_v33  ;;  %1141 = vrcp.f32 %v622_v35  ;;  %1082 = vmatmul.msk.bf16.vlgmr.msrb.gmra.mxu2 %vm108_vm7, %v807_v32 }
 0x612   :  { %v763_v37 = vpack.c.bf16 %v635_v34, %v635_v34  ;;  %1143 = vrcp.f32 %v619_v18 }
 0x613   :  { %v834_v38 = vunpack.c.l.b16 %v764_v36 }
 0x614   :  { %v833_v22 = vunpack.c.l.b16 %v763_v37 }
 0x616   :  { %v835_v39 = vpack.c.b16 %v834_v38, %v833_v22 }
 0x617   :  { %v1142_v41 = vpop.eup %1141 }
 0x618   :  { %v1144_v43 = vpop.eup %1143  ;;  %v638_v40 = vmul.f32 %v1142_v41, %v1126_v1  ;;  %1083 = vmatmul.msk.bf16.vlgmr.msrb.gmra.mxu0 %vm108_vm7, %v835_v39 }
 0x619   :  { %v637_v44 = vmul.f32 %v1144_v43, %v1128_v3 }
 0x61a   :  { %v766_v42 = vpack.c.bf16 %v638_v40, %v638_v40 }
 0x61b   :  { %v765_v45 = vpack.c.bf16 %v637_v44, %v637_v44 }
 0x61c   :  { %v862_v46 = vunpack.c.l.b16 %v766_v42 }
 0x61d   :  { %v861_v47 = vunpack.c.l.b16 %v765_v45 }
 0x61f   :  { %v863_v48 = vpack.c.b16 %v862_v46, %v861_v47 }
 0x621   :  { %1084 = vmatmul.msk.bf16.vlgmr.msrb.gmra.mxu1 %vm108_vm7, %v863_v48 }
 0x692   :  { %v798_v49 = vpop.f32.mrf.mxu3 }
 0x693   :  { %v887_v53 = vsel %vm59_vm0, %v798_v49, 0.0 }
 0x694   :  { %v826_v51 = vpop.f32.mrf.mxu2 }
 0x695   :  { %v854_v52 = vpop.f32.mrf.mxu0  ;;  %v888_v54 = vsel %vm59_vm0, %v826_v51, 0.0 }
 0x696   :  { %v889_v57 = vadd.f32 %v888_v54, %v887_v53  ;;  %v890_v59 = vsel %vm59_vm0, %v854_v52, 0.0 }
 0x698   :  { %v891_v0 = vadd.f32 %v890_v59, %v889_v57 }
 0x69a   :  { %v800_v55 = vpop.f32.mrf.mxu3 }
 0x69b   :  { %v894_v60 = vsel %vm59_vm0, %v800_v55, 0.0 }
 0x69c   :  { %v828_v56 = vpop.f32.mrf.mxu2 }
 0x69d   :  { %v895_v61 = vsel %vm59_vm0, %v828_v56, 0.0  ;;  %v856_v62 = vpop.f32.mrf.mxu0 }
 0x69e   :  { %v882_v58 = vpop.f32.mrf.mxu1  ;;  %v896_v1 = vadd.f32 %v895_v61, %v894_v60  ;;  %v897_v3 = vsel %vm59_vm0, %v856_v62, 0.0 }
 0x69f   :  { %v892_v63 = vsel %vm59_vm0, %v882_v58, 0.0 }
 0x6a0   :  { %v893_v4 = vadd.f32 %v892_v63, %v891_v0  ;;  %v898_v6 = vadd.f32 %v897_v3, %v896_v1 }
 0x6a2   :  { %v902_v9 = vadd.f32 %v901_v5, %v893_v4 }
 0x6a4   :  { %v904_v12 = vmax.f32 %v902_v9, 0.0 }
 0x6a6   :  { %v884_v7 = vpop.f32.mrf.mxu1 }
 0x6a7   :  { %v899_v8 = vsel %vm59_vm0, %v884_v7, 0.0 }
 0x6a8   :  { %v900_v10 = vadd.f32 %v899_v8, %v898_v6 }
 0x6aa   :  { %v903_v11 = vadd.f32 %v901_v5, %v900_v10 }
 0x6ac   :  { %v905_v13 = vmax.f32 %v903_v11, 0.0 }
 0x6ae   :  { %v907_v2 = vpack.c.bf16 %v905_v13, %v904_v12 }
 0x6b0   :  { %v920_v14 = vsel %vm59_vm0, %v907_v2, 0 }
 0x6b1   :  { %929 = vmatpush.bf16.xpose.msrb.mxu3 %v920_v14 }
 0x6b8   :  { %1085 = vmatmul.msk.bf16.vlgmr.msrb.gmra.mxu3 %vm59_vm0, %v913_v16 }
 0x73b   :  { %v931_v20 = vpop.f32.mrf.mxu3 }
 0x73c   :  { %v932_v21 = vadd.f32 %v931_v20, %v914_v19 }
 0x73e   :  { %v935_v23 = vsub.f32 0.0, %v932_v21 }
 0x740   :  { %v936_v24 = vmul.f32 1.442695, %v935_v23 }
 0x742   :  { %1145 = vpow2.f32 %v936_v24 }
 0x743   :  { %v933_v26 = vpop.f32.mrf.mxu3 }
 0x748   :  { %v1146_v25 = vpop.eup %1145 }
 0x749   :  { %v938_v27 = vadd.f32 1.0, %v1146_v25 }
 0x74b   :  { %1147 = vrcp.f32 %v938_v27  ;;  %v950_v31 = vand.u32 2147483648, %v938_v27  ;;  %v948_v32 = vand.u32 2147483647, %v938_v27  ;;  %vm944_vm0 = vweird.f32 %v938_v27 }
 0x74d   :  { %v951_v34 = vor.u32 1.1754944e-38, %v950_v31  ;;  %vm949_vm14 = vcmp.eq.f32.partialorder %v948_v32, 8.507059e+37 }
 0x751   :  { %v1148_v28 = vpop.eup %1147 }
 0x752   :  { %v940_v29 = vmul.f32 %v1148_v28, %v938_v27  ;;  %vm945_vm7 = vweird.f32 %v1148_v28 }
 0x753   :  { %vm946_vm8 = vmor %vm944_vm0, %vm945_vm7 }
 0x754   :  { %v941_v30 = vsub.f32 1.0, %v940_v29 }
 0x756   :  { %v942_v50 = vmul.f32 %v1148_v28, %v941_v30 }
 0x758   :  { %v943_v33 = vadd.f32 %v1148_v28, %v942_v50 }
 0x75a   :  { %v947_v35 = vsel %vm946_vm8, %v1148_v28, %v943_v33 }
 0x75b   :  { %v952_v18 = vsel %vm949_vm14, %v951_v34, %v947_v35 }
 0x75c   :  { %v955_v36 = vsel %vm954_vm11, %v952_v18, -inf }
 0x75d   :  { %956 = vmax.xlane.f32.xlu0 %v955_v36 }
 0x7d0   :  { %v957_v37 = vpop.xlane.xlu0 %956 }
 0x7d1   :  { %v958_v38 = vsub.f32 %v952_v18, %v957_v37 }
 0x7d3   :  { %v959_v22 = vmul.f32 1.442695, %v958_v38 }
 0x7d5   :  { %1149 = vpow2.f32 %v959_v22 }
 0x7db   :  { %v1150_v39 = vpop.eup %1149 }
 0x7dc   :  { %v961_v41 = vsel %vm954_vm11, %v1150_v39, 0.0 }
 0x7dd   :  { %962 = vadd.xlane.f32.xlu1 %v961_v41 }
 0x850   :  { %v963_v43 = vpop.xlane.xlu1 %962 }
 0x851   :  { %1151 = vrcp.f32 %v963_v43  ;;  %v975_v45 = vand.u32 2147483648, %v963_v43  ;;  %v973_v47 = vand.u32 2147483647, %v963_v43  ;;  %vm969_vm1 = vweird.f32 %v963_v43 }
 0x853   :  { %v976_v49 = vor.u32 1.1754944e-38, %v975_v45  ;;  %vm974_vm3 = vcmp.eq.f32.partialorder %v973_v47, 8.507059e+37 }
 0x857   :  { %v1152_v40 = vpop.eup %1151 }
 0x858   :  { %v965_v44 = vmul.f32 %v1152_v40, %v963_v43  ;;  %vm970_vm15 = vweird.f32 %v1152_v40 }
 0x859   :  { %vm971_vm2 = vmor %vm969_vm1, %vm970_vm15 }
 0x85a   :  { %v966_v42 = vsub.f32 1.0, %v965_v44 }
 0x85c   :  { %v967_v46 = vmul.f32 %v1152_v40, %v966_v42 }
 0x85e   :  { %v968_v48 = vadd.f32 %v1152_v40, %v967_v46 }
 0x860   :  { %v972_v51 = vsel %vm971_vm2, %v1152_v40, %v968_v48 }
 0x861   :  { %v977_v52 = vsel %vm974_vm3, %v976_v49, %v972_v51 }
 0x862   :  { %v978_v53 = vmul.f32 %v1150_v39, %v977_v52 }
 0x864   :  { %979 = vst.msk [vmem:[#allocation5] sm:$0x1] %vm954_vm11, %v978_v53 }
 0x865   :  { %990 = dma.vmem_to_hbm [thread:$0]  %s986_s9, 16, %s988_s0, [#allocation4]  }
 0x866   :  { %1203 = dma.done.wait [#allocation4], 16  }
 0x867   :  { %1204 = vsyncadd [#allocation4], 4294967280 }
 0x868   :  { %995 = vsyncpa [#allocation3], 1 }
 0x869   :  { %996 = vsyncpa [#allocation4], 1 }

</bundles_post_ra>
